<compile_context>
chip_gen: v7x
topology: tpu7x:2x2x1
jax: 0.10.0
libtpu: 0.0.40
codegen_flags: <defaults>
</compile_context>

<pallas_src>
import jax
import jax.numpy as jnp
from jax.experimental import pallas as pl
from jax.experimental.pallas import tpu as pltpu


_LANE = 128
# minimum sublane multiple per element width (f32 -> 8, bf16 -> 16, int8/fp8 -> 32)
_SUBLANE_MULT = {4: 8, 2: 16, 1: 32}
# Force >=2 grid blocks for inputs at/above this size so the in/out DMAs
# pipeline (and both v7x TensorCores get work).  Neutral on single-TC chips.
_MIN_SPLIT_BYTES = 512 * 1024


def _tpu_tuning():
    """Pick (target_block_bytes, vmem_limit_bytes, two_tensorcores) per TPU gen.

    Pallas double-buffers both the input and the output block (4 buffers
    total), so total pipeline VMEM ~= 4 * block_bytes.
    """
    kind = ""
    try:
        dev = jax.devices()[0]
        if dev.platform == "tpu":
            kind = dev.device_kind.lower()
    except Exception:
        pass
    if "v7" in kind or "7x" in kind:
        # 3.2 TB/s HBM: 6 MiB blocks keep the ~0.35us/step overhead <10%.
        # 4 * 6 MiB = 24 MiB; raise scoped VMEM to 48 MiB (64 MiB/TC physical).
        return 6 * 1024 * 1024, 48 * 1024 * 1024, True
    if "v6" in kind:
        # 1.3-1.4 TB/s HBM, 128 MiB physical VMEM: 6 MiB blocks, 64 MiB scoped.
        return 6 * 1024 * 1024, 64 * 1024 * 1024, False
    if "v5" in kind:
        # Already near roofline at 2 MiB; 4 * 2 MiB = 8 MiB fits the 16 MiB
        # scoped-VMEM default, so no override needed.
        return 2 * 1024 * 1024, None, False
    # Unknown chip / interpret mode: conservative defaults.
    return 2 * 1024 * 1024, None, False


def _make_lambda_kernel(fn):
    def kernel(x_ref, o_ref):
        o_ref[...] = fn(x_ref[...]).astype(o_ref.dtype)
    return kernel


class PallasLambda:
    """JAX/Pallas analogue of cflearn's Lambda(nn.Module).

    Wraps an arbitrary traceable *elementwise* callable `fn` and applies it
    inside a Pallas TPU kernel over lane-dense (rows, 128) VMEM tiles.
    The flatten-to-slab layout destroys axis structure, so fns with any
    cross-element dependence (softmax, norms, reductions) are rejected.
    """

    def __init__(self, fn, name: str = None):
        self.name = name
        self.fn = fn
        self._kernel = _make_lambda_kernel(fn)
        self._block_bytes, self._vmem_limit, self._two_tc = _tpu_tuning()
        # jit caches per (shape, dtype): removes per-call trace/dispatch
        # overhead and lets XLA fuse the wrapper-side reshape/concat glue.
        self._jit_forward = jax.jit(self._forward)

    def __repr__(self):
        return f"PallasLambda({'' if self.name is None else self.name})"

    # TODO(synk): multi-arg / kwarg / non-elementwise Lambdas (fully generic in
    # the PyTorch module) have no single Pallas fast path; only the
    # single-tensor elementwise case is implemented here.
    def __call__(self, x):
        return self._jit_forward(x)

    # ---- internals -------------------------------------------------------

    def _run_slab(self, slab, out_dtype, sub):
        """Run the elementwise kernel over a lane-dense (rows, 128) slab."""
        rows = slab.shape[0]
        itemsize = max(jnp.dtype(slab.dtype).itemsize, jnp.dtype(out_dtype).itemsize)

        # Dtype-aware tile rows targeting the generation's block budget,
        # rounded to the sublane multiple so vregs stay full / stores unmasked.
        tr_max = self._block_bytes // (_LANE * itemsize)
        tr_max = max(sub, (tr_max // sub) * sub)

        if rows > tr_max:
            tr = tr_max  # ragged last block handled by Pallas' masked boundary
        else:
            tr = rows    # single full-extent block (equals full array dim)
            slab_bytes = rows * _LANE * itemsize
            if slab_bytes >= _MIN_SPLIT_BYTES and rows >= 2 * sub:
                # Split a would-be single block so in/out DMAs pipeline and
                # (on 2-TC v7x) both cores get work.
                nblk = 4 if self._two_tc else 2
                tr = max(sub, ((rows // nblk) // sub) * sub)
        grid = (pl.cdiv(rows, tr),)

        # Advisory cost hint reflecting the actual fn (not hard-coded SiLU).
        try:
            cost = pl.estimate_cost(
                self.fn, jax.ShapeDtypeStruct((rows, _LANE), slab.dtype))
        except Exception:
            cost = None

        # NOTE: pipeline_mode=pl.Buffered(3) on the in_spec is a further 2-5%
        # option if an xprof trace shows exposed DMA bubbles at step edges.
        return pl.pallas_call(
            self._kernel,
            out_shape=jax.ShapeDtypeStruct((rows, _LANE), out_dtype),
            grid_spec=pltpu.PrefetchScalarGridSpec(
                num_scalar_prefetch=0,
                grid=grid,
                in_specs=[pl.BlockSpec((tr, _LANE), lambda i: (i, 0))],
                out_specs=pl.BlockSpec((tr, _LANE), lambda i: (i, 0)),
            ),
            compiler_params=pltpu.CompilerParams(
                dimension_semantics=("parallel",),
                vmem_limit_bytes=self._vmem_limit,
            ),
            cost_estimate=cost,
        )(slab)

    def _forward(self, x):
        orig_shape = x.shape
        in_dtype = x.dtype
        total = x.size
        if total == 0:
            return self.fn(x)

        itemsize_in = jnp.dtype(in_dtype).itemsize
        sub_in = _SUBLANE_MULT.get(itemsize_in, 8)

        # Assert the elementwise contract (shape-preserving fn) at trace time.
        probe = jax.ShapeDtypeStruct((sub_in, _LANE), in_dtype)
        out_abs = jax.eval_shape(self.fn, probe)
        if out_abs.shape != probe.shape:
            raise ValueError(
                "PallasLambda only supports elementwise (shape-preserving) fns; "
                f"fn mapped {probe.shape} -> {out_abs.shape}")
        out_dtype = out_abs.dtype
        sub = max(sub_in, _SUBLANE_MULT.get(jnp.dtype(out_dtype).itemsize, 8))

        # Flatten to a lane-dense slab; process the multiple-of-128 head in the
        # Pallas kernel and the <=127-element tail in plain jnp (no whole-array
        # pad/slice HBM round trips).
        flat = x.reshape(-1)
        main = (total // _LANE) * _LANE

        pieces = []
        if main > 0:
            head = flat if main == total else flat[:main]
            slab = head.reshape(main // _LANE, _LANE)  # free view in common case
            pieces.append(self._run_slab(slab, out_dtype, sub).reshape(-1))
        if main != total:
            tail = flat[main:]
            pieces.append(self.fn(tail).astype(out_dtype))

        out_flat = pieces[0] if len(pieces) == 1 else jnp.concatenate(pieces)
        return out_flat.reshape(orig_shape)


if __name__ == "__main__":
    key = jax.random.PRNGKey(0)
    # small NCHW input consistent with a conv-style Lambda usage
    x = jax.random.normal(key, (2, 4, 16, 16), dtype=jnp.float32)

    # concrete fn for the Lambda (elementwise SiLU); Lambda itself is generic
    fn = lambda t: t * jax.nn.sigmoid(t)

    lam = PallasLambda(fn, name="silu")
    y = jax.block_until_ready(lam(x))

    # verify against a plain JAX reference of the same fn
    y_ref = fn(x)
    assert y.shape == x.shape and y.dtype == x.dtype
    assert jnp.allclose(y, y_ref, atol=1e-6, rtol=1e-6)

    # ragged size (not a multiple of 128): exercises the head-kernel + jnp-tail path
    x2 = jax.random.normal(jax.random.fold_in(key, 1), (5, 77), dtype=jnp.float32)
    y2 = jax.block_until_ready(lam(x2))
    assert y2.shape == x2.shape and y2.dtype == x2.dtype
    assert jnp.allclose(y2, fn(x2), atol=1e-6, rtol=1e-6)

    print("KERNEL_OK")
</pallas_src>

<mosaic_0001>
module attributes {stable_mosaic.version = 11 : i64} {
  func.func @kernel(%arg0: i32, %arg1: memref<16x128xf32, #tpu.memory_space<vmem>>, %arg2: memref<16x128xf32, #tpu.memory_space<vmem>>) attributes {dimension_semantics = [#tpu.dimension_semantics<parallel>], iteration_bounds = array<i64: 1>, scalar_prefetch = 0 : i64, scratch_operands = 0 : i64, tpu.core_type = #tpu.core_type<tc>, window_params = [{transform_indices = @transform_0, window_bounds = array<i64: 16, 128>}, {transform_indices = @transform_1, window_bounds = array<i64: 16, 128>}]} {
    %c0 = arith.constant 0 : index
    %c0_0 = arith.constant 0 : index
    %0 = vector.load %arg1[%c0, %c0_0] : memref<16x128xf32, #tpu.memory_space<vmem>>, vector<16x128xf32>
    %1 = arith.negf %0 : vector<16x128xf32>
    %2 = math.exp %1 : vector<16x128xf32>
    %cst = arith.constant 1.000000e+00 : f32
    %3 = vector.broadcast %cst : f32 to vector<16x128xf32>
    %4 = arith.addf %3, %2 : vector<16x128xf32>
    %5 = arith.divf %3, %4 : vector<16x128xf32>
    %6 = arith.mulf %0, %5 : vector<16x128xf32>
    %c0_1 = arith.constant 0 : index
    %c0_2 = arith.constant 0 : index
    %7 = vector.load %arg2[%c0_1, %c0_2] : memref<16x128xf32, #tpu.memory_space<vmem>>, vector<16x128xf32>
    tpu.vector_store %arg2[%c0_1, %c0_2], %6 {strides = array<i32>} : memref<16x128xf32, #tpu.memory_space<vmem>>, vector<16x128xf32>,
    return
  }
  func.func @transform_0(%arg0: i32) -> (i32, i32) {
    %c0_i32 = arith.constant 0 : i32
    %c0_i32_0 = arith.constant 0 : i32
    return %arg0, %c0_i32 : i32, i32
  }
  func.func @transform_1(%arg0: i32) -> (i32, i32) {
    %c0_i32 = arith.constant 0 : i32
    %c0_i32_0 = arith.constant 0 : i32
    return %arg0, %c0_i32 : i32, i32
  }
}

</mosaic_0001>

<bundles_post_ra>
// kernel: _forward.1
= control target key start
LH: loop header
LB: loop body
LE: loop exit
PB: predicated region body
PF: predicated region fallthrough
CT: control target
= control target key end

     0   :  { %s62_s0 = inlined_call_operand.vmem [shape: f32[16,128], index: 0, kind: input, shape index: {}]   ;;  %s63_s1 = inlined_call_operand.vmem [shape: f32[16,128], index: 1, kind: output, shape index: {}]  }
   0x1   :  { %v8_v0 = vld [vmem:[%s62_s0] sm:$0xff]  ;;  %v9_v1 = vld [vmem:[%s62_s0 + $0x8] sm:$0xff] }
   0x2   :  { %v30_v2 = vmul.f32 -1.442695, %v8_v0  ;;  %v31_v3 = vmul.f32 -1.442695, %v9_v1 }
   0x4   :  { %32 = vpow2.f32 %v30_v2 }
   0x5   :  { %34 = vpow2.f32 %v31_v3 }
   0xe   :  { %v33_v4 = vpop.eup %32 }
   0xf   :  { %v35_v5 = vpop.eup %34  ;;  %v16_v6 = vadd.f32 1.0, %v33_v4 }
  0x10   :  { %v17_v7 = vadd.f32 1.0, %v35_v5 }
  0x11   :  { %36 = vrcp.f32 %v16_v6 }
  0x12   :  { %38 = vrcp.f32 %v17_v7 }
  0x1b   :  { %v37_v8 = vpop.eup %36 }
  0x1c   :  { %v39_v9 = vpop.eup %38  ;;  %v22_v10 = vmul.f32 %v37_v8, %v8_v0 }
  0x1d   :  { %v23_v11 = vmul.f32 %v39_v9, %v9_v1 }
  0x1e   :  { %24 = vst [vmem:[%s63_s1] sm:$0xff] %v22_v10 }
  0x1f   :  { %25 = vst [vmem:[%s63_s1 + $0x8] sm:$0xff] %v23_v11 }

</bundles_post_ra>
